<compile_context>
chip_gen: v7x
topology: tpu7x:2x2x1
jax: 0.10.0
libtpu: 0.0.40
codegen_flags: <defaults>
</compile_context>

<pallas_src>
import functools

import jax
import jax.numpy as jnp
from jax.experimental import pallas as pl
from jax.experimental.pallas import tpu as pltpu

EPS = 1e-5  # torch.nn.LayerNorm default


def _round_up(a, b):
    return (a + b - 1) // b * b


def _vmem_capacity_bytes():
    try:
        return int(pltpu.get_tpu_info().vmem_capacity_bytes)
    except Exception:
        return 64 << 20  # conservative fallback (v7x per-TensorCore VMEM)


def _layernorm_affine_f32(x_f32, gamma_f32, beta_f32):
    mean = jnp.mean(x_f32, axis=-1, keepdims=True)
    cen = x_f32 - mean
    var = jnp.mean(cen * cen, axis=-1, keepdims=True)
    return cen * jax.lax.rsqrt(var + EPS) * gamma_f32 + beta_f32


def _residual_resident_kernel(x_ref, gamma_ref, beta_ref, w_ref, b_ref, o_ref):
    """Weight fully resident: one (tile_m, H) output tile per grid step."""
    xf = x_ref[...].astype(jnp.float32)
    y = _layernorm_affine_f32(xf,
                              gamma_ref[...].astype(jnp.float32),
                              beta_ref[...].astype(jnp.float32))
    # Matmul in the weight's native dtype (bf16 weight -> bf16 MXU), f32 acc.
    z = jnp.dot(y.astype(w_ref.dtype), w_ref[...],
                preferred_element_type=jnp.float32)
    z = z + b_ref[...].astype(jnp.float32)
    # dropout(p=0) == identity; residual add.
    o_ref[...] = (z + xf).astype(o_ref.dtype)


def _residual_ntiled_kernel(x_ref, gamma_ref, beta_ref, w_ref, b_ref, o_ref,
                            y_scratch, *, tile_n):
    """Weight tiled over output columns: grid = (rows, cols), cols innermost.

    The full-row x block is resident across the (arbitrary) column axis, so
    LayerNorm runs once per row tile at j == 0 and is cached in y_scratch
    (already downcast to the matmul input dtype).  The residual columns are
    sliced from that same resident x block -- no second x stream from HBM.
    """
    j = pl.program_id(1)

    @pl.when(j == 0)
    def _():
        xf = x_ref[...].astype(jnp.float32)
        y = _layernorm_affine_f32(xf,
                                  gamma_ref[...].astype(jnp.float32),
                                  beta_ref[...].astype(jnp.float32))
        y_scratch[...] = y.astype(y_scratch.dtype)

    z = jnp.dot(y_scratch[...], w_ref[...], preferred_element_type=jnp.float32)
    z = z + b_ref[...].astype(jnp.float32)
    col0 = pl.multiple_of(j * tile_n, 128)
    xres = x_ref[:, pl.ds(col0, tile_n)].astype(jnp.float32)
    # dropout(p=0) == identity; residual add with the matching x columns.
    o_ref[...] = (z + xres).astype(o_ref.dtype)


def residual_connection_layer(x, gamma, beta, w, b, *, dr_rate=0.0,
                              training=False, tile_m=None, tile_n=None,
                              cast_weight_to_bf16=False):
    """out = x + dropout(Linear(LayerNorm(x))), x: (B, S, H)."""
    if training and dr_rate > 0.0:
        # TODO(synk): training-mode dropout mask via pltpu.prng_seed /
        # pltpu.prng_random_bits scaled by 1/(1-p); module default is p=0.
        raise NotImplementedError("training-mode dropout not implemented")

    B, S, H = x.shape
    M = B * S
    out_dtype = x.dtype

    if cast_weight_to_bf16 and w.dtype == jnp.float32:
        # Opt-in: bf16 MXU inputs (f32 accumulate) -> ~2x matmul throughput
        # and half the weight HBM bytes, at a small numerics cost.
        w = w.astype(jnp.bfloat16)

    itm_x = x.dtype.itemsize
    itm_w = w.dtype.itemsize
    itm_o = itm_x  # output dtype == input dtype

    # --- generation-aware VMEM budget --------------------------------------
    vmem_cap = _vmem_capacity_bytes()          # 128 MiB v5e/v6e, 64 MiB v7x
    small_vmem = vmem_cap <= (96 << 20)
    ws_budget = min(int(vmem_cap * 0.45), 96 << 20)
    w_resident_budget = min(vmem_cap // 8, 16 << 20)
    fixed_small = 256 * H                      # gamma/beta/bias blocks (padded)

    # --- weight strategy / tile_n -------------------------------------------
    w_bytes = H * H * itm_w
    if tile_n is None:
        if w_bytes <= w_resident_budget:
            tile_n = H                         # resident weight: one DMA total
        else:
            divisors_128 = [c for c in range(128, min(H, 1024) + 1, 128)
                            if H % c == 0]
            if 512 in divisors_128:            # fills the 256-wide MXU (v6e/v7x)
                tile_n = 512
            elif 256 in divisors_128:
                tile_n = 256
            elif divisors_128:
                tile_n = max(divisors_128)
            else:
                tile_n = H                     # odd H: stay resident (rare)
    assert H % tile_n == 0, "tile_n must divide H"
    gn = H // tile_n
    if gn > 1:
        assert tile_n % 128 == 0, "N-tiling requires tile_n % 128 == 0"

    # --- rows tile: size from the VMEM budget (conservatively assumes
    #     double-buffered invariants so the Buffered(1) fallback still fits) --
    M8 = _round_up(M, 8)
    tile_m_req = (512 if small_vmem else 1024) if tile_m is None \
        else max(int(tile_m), 8)
    if gn == 1:
        per_row = 2 * H * itm_x + 2 * H * itm_o
        fixed = 2 * w_bytes + fixed_small
    else:
        per_row = 2 * H * itm_x + H * itm_w + 2 * tile_n * itm_o
        fixed = 2 * H * tile_n * itm_w + fixed_small
    avail = ws_budget - fixed
    tile_m_cap = max(8, (max(avail, 0) // per_row) // 8 * 8)
    tile_m = max(8, min(tile_m_req, tile_m_cap, M8))
    tile_m = _round_up(tile_m, 8)
    # Megacore: guarantee >= 2 steps on the "parallel" rows axis when possible
    # so both v7x TensorCores get work (harmless sequential split elsewhere).
    if tile_m >= M8 and M8 >= 16:
        tile_m = _round_up((M8 + 1) // 2, 8)

    Mp = _round_up(M, tile_m)
    gm = Mp // tile_m

    # --- flatten / pad -------------------------------------------------------
    x2 = x.reshape(M, H)
    if Mp != M:
        x2 = jnp.pad(x2, ((0, Mp - M), (0, 0)))
    gamma2 = gamma.reshape(1, H)
    beta2 = beta.reshape(1, H)
    b2 = b.reshape(1, H)

    # --- honest VMEM limit / cost hint (per chosen path) ---------------------
    if gn == 1:
        vmem_needed = (2 * tile_m * H * itm_x + 2 * tile_m * H * itm_o
                       + 2 * w_bytes + fixed_small)
        bytes_accessed = Mp * H * itm_x + Mp * H * itm_o + w_bytes + 3 * H * 4
    else:
        vmem_needed = (2 * tile_m * H * itm_x + tile_m * H * itm_w
                       + 2 * tile_m * tile_n * itm_o
                       + 2 * H * tile_n * itm_w + fixed_small)
        bytes_accessed = (Mp * H * itm_x + Mp * H * itm_o
                          + gm * w_bytes + 3 * H * 4)
    vmem_limit = min(int(vmem_needed * 1.3) + (4 << 20), vmem_cap)
    cost = pl.CostEstimate(flops=2 * Mp * H * H + 10 * Mp * H,
                           transcendentals=Mp,
                           bytes_accessed=int(bytes_accessed))

    compiler_params = pltpu.CompilerParams(
        dimension_semantics=("parallel",) if gn == 1
        else ("parallel", "arbitrary"),
        vmem_limit_bytes=vmem_limit)

    def _build_and_run(single_buffer_invariants):
        # Grid-invariant operands don't need a second pipeline buffer.
        inv = ({"pipeline_mode": pl.Buffered(1)}
               if single_buffer_invariants else {})
        if gn == 1:
            return pl.pallas_call(
                _residual_resident_kernel,
                out_shape=jax.ShapeDtypeStruct((Mp, H), out_dtype),
                grid_spec=pltpu.PrefetchScalarGridSpec(
                    num_scalar_prefetch=0,
                    grid=(gm,),
                    in_specs=[
                        pl.BlockSpec((tile_m, H), lambda i: (i, 0)),    # x tile
                        pl.BlockSpec((1, H), lambda i: (0, 0), **inv),  # gamma
                        pl.BlockSpec((1, H), lambda i: (0, 0), **inv),  # beta
                        pl.BlockSpec((H, H), lambda i: (0, 0), **inv),  # weight
                        pl.BlockSpec((1, H), lambda i: (0, 0), **inv),  # bias
                    ],
                    out_specs=pl.BlockSpec((tile_m, H), lambda i: (i, 0)),
                ),
                compiler_params=compiler_params,
                cost_estimate=cost,
            )(x2, gamma2, beta2, w, b2)
        return pl.pallas_call(
            functools.partial(_residual_ntiled_kernel, tile_n=tile_n),
            out_shape=jax.ShapeDtypeStruct((Mp, H), out_dtype),
            grid_spec=pltpu.PrefetchScalarGridSpec(
                num_scalar_prefetch=0,
                grid=(gm, gn),
                in_specs=[
                    pl.BlockSpec((tile_m, H), lambda i, j: (i, 0)),     # x rows
                    pl.BlockSpec((1, H), lambda i, j: (0, 0), **inv),   # gamma
                    pl.BlockSpec((1, H), lambda i, j: (0, 0), **inv),   # beta
                    pl.BlockSpec((H, tile_n), lambda i, j: (0, j)),     # W cols
                    pl.BlockSpec((1, tile_n), lambda i, j: (0, j)),     # b cols
                ],
                out_specs=pl.BlockSpec((tile_m, tile_n), lambda i, j: (i, j)),
                scratch_shapes=[pltpu.VMEM((tile_m, H), w.dtype)],
            ),
            compiler_params=compiler_params,
            cost_estimate=cost,
        )(x2, gamma2, beta2, w, b2)

    try:
        out = _build_and_run(True)
    except Exception:
        # pipeline_mode=pl.Buffered(1) not supported by this jax/Mosaic build:
        # fall back to default double buffering (tile sizes already budgeted
        # for that case).
        out = _build_and_run(False)

    if Mp != M:
        out = out[:M]
    return out.reshape(B, S, H)


def _reference(x, gamma, beta, w, b):
    xf = x.astype(jnp.float32)
    mean = jnp.mean(xf, axis=-1, keepdims=True)
    var = jnp.mean((xf - mean) ** 2, axis=-1, keepdims=True)
    y = (xf - mean) * jax.lax.rsqrt(var + EPS) * gamma + beta
    z = jnp.einsum("bsh,hk->bsk", y, w.astype(jnp.float32)) + b
    return (z + xf).astype(x.dtype)


if __name__ == "__main__":
    key = jax.random.PRNGKey(0)
    kx, kg, kb, kw, kbi, kx2, kw2 = jax.random.split(key, 7)

    # --- case 1: small module-consistent shape (resident-weight path,
    #             auto tile selection, >=2 parallel row steps) --------------
    B, S, H = 2, 8, 32
    x = jax.random.normal(kx, (B, S, H), dtype=jnp.float32)
    gamma = 1.0 + 0.01 * jax.random.normal(kg, (H,), dtype=jnp.float32)
    beta = 0.01 * jax.random.normal(kb, (H,), dtype=jnp.float32)
    w = jax.random.normal(kw, (H, H), dtype=jnp.float32) / jnp.sqrt(H)
    b = 0.01 * jax.random.normal(kbi, (H,), dtype=jnp.float32)

    out = jax.block_until_ready(residual_connection_layer(x, gamma, beta, w, b))
    ref = _reference(x, gamma, beta, w, b)
    assert out.shape == (B, S, H)
    assert jnp.allclose(out, ref, atol=5e-4, rtol=5e-4)

    # --- case 2: exercises M padding (M=50) + N-tiled weight path
    #             with a 256-wide column tile (MXU-friendly) ----------------
    B2, S2, H2 = 2, 25, 512
    x_b = jax.random.normal(kx2, (B2, S2, H2), dtype=jnp.float32)
    gamma_b = jnp.ones((H2,), jnp.float32)
    beta_b = jnp.zeros((H2,), jnp.float32)
    w_b = jax.random.normal(kw2, (H2, H2), dtype=jnp.float32) / jnp.sqrt(H2)
    b_b = jnp.zeros((H2,), jnp.float32)

    out_b = jax.block_until_ready(
        residual_connection_layer(x_b, gamma_b, beta_b, w_b, b_b,
                                  tile_m=32, tile_n=256))
    ref_b = _reference(x_b, gamma_b, beta_b, w_b, b_b)
    assert out_b.shape == (B2, S2, H2)
    assert jnp.allclose(out_b, ref_b, atol=5e-4, rtol=5e-4)

    print("KERNEL_OK")
</pallas_src>

<mosaic_0001>
module attributes {stable_mosaic.version = 11 : i64} {
  func.func @_residual_resident_kernel(%arg0: i32, %arg1: memref<8x32xf32, #tpu.memory_space<vmem>>, %arg2: memref<1x32xf32, #tpu.memory_space<vmem>>, %arg3: memref<1x32xf32, #tpu.memory_space<vmem>>, %arg4: memref<32x32xf32, #tpu.memory_space<vmem>>, %arg5: memref<1x32xf32, #tpu.memory_space<vmem>>, %arg6: memref<8x32xf32, #tpu.memory_space<vmem>>) attributes {dimension_semantics = [#tpu.dimension_semantics<parallel>], iteration_bounds = array<i64: 2>, scalar_prefetch = 0 : i64, scratch_operands = 0 : i64, tpu.core_type = #tpu.core_type<tc>, window_params = [{transform_indices = @transform_0, window_bounds = array<i64: 8, 32>}, {pipeline_mode = #tpu.pipeline_mode<synchronous>, transform_indices = @transform_1, window_bounds = array<i64: 1, 32>}, {pipeline_mode = #tpu.pipeline_mode<synchronous>, transform_indices = @transform_2, window_bounds = array<i64: 1, 32>}, {pipeline_mode = #tpu.pipeline_mode<synchronous>, transform_indices = @transform_3, window_bounds = array<i64: 32, 32>}, {pipeline_mode = #tpu.pipeline_mode<synchronous>, transform_indices = @transform_4, window_bounds = array<i64: 1, 32>}, {transform_indices = @transform_5, window_bounds = array<i64: 8, 32>}]} {
    %c0 = arith.constant 0 : index
    %c0_0 = arith.constant 0 : index
    %0 = vector.load %arg1[%c0, %c0_0] : memref<8x32xf32, #tpu.memory_space<vmem>>, vector<8x32xf32>
    %c0_1 = arith.constant 0 : index
    %c0_2 = arith.constant 0 : index
    %1 = vector.load %arg2[%c0_1, %c0_2] : memref<1x32xf32, #tpu.memory_space<vmem>>, vector<1x32xf32>
    %c0_3 = arith.constant 0 : index
    %c0_4 = arith.constant 0 : index
    %2 = vector.load %arg3[%c0_3, %c0_4] : memref<1x32xf32, #tpu.memory_space<vmem>>, vector<1x32xf32>
    %cst = arith.constant dense<0.000000e+00> : vector<8xf32>
    %3 = vector.multi_reduction <add>, %0, %cst [1] : vector<8x32xf32> to vector<8xf32>
    %4 = vector.shape_cast %3 : vector<8xf32> to vector<8x1xf32>
    %cst_5 = arith.constant 3.200000e+01 : f32
    %5 = vector.broadcast %cst_5 : f32 to vector<8x1xf32>
    %6 = arith.divf %4, %5 : vector<8x1xf32>
    %7 = vector.broadcast %6 : vector<8x1xf32> to vector<8x32xf32>
    %8 = arith.subf %0, %7 : vector<8x32xf32>
    %9 = arith.mulf %8, %8 : vector<8x32xf32>
    %cst_6 = arith.constant dense<0.000000e+00> : vector<8xf32>
    %10 = vector.multi_reduction <add>, %9, %cst_6 [1] : vector<8x32xf32> to vector<8xf32>
    %11 = vector.shape_cast %10 : vector<8xf32> to vector<8x1xf32>
    %cst_7 = arith.constant 3.200000e+01 : f32
    %12 = vector.broadcast %cst_7 : f32 to vector<8x1xf32>
    %13 = arith.divf %11, %12 : vector<8x1xf32>
    %cst_8 = arith.constant 9.99999974E-6 : f32
    %14 = vector.broadcast %cst_8 : f32 to vector<8x1xf32>
    %15 = arith.addf %13, %14 : vector<8x1xf32>
    %16 = math.rsqrt %15 : vector<8x1xf32>
    %17 = vector.broadcast %16 : vector<8x1xf32> to vector<8x32xf32>
    %18 = arith.mulf %8, %17 : vector<8x32xf32>
    %19 = vector.broadcast %1 : vector<1x32xf32> to vector<8x32xf32>
    %20 = arith.mulf %18, %19 : vector<8x32xf32>
    %21 = vector.broadcast %2 : vector<1x32xf32> to vector<8x32xf32>
    %22 = arith.addf %20, %21 : vector<8x32xf32>
    %c0_9 = arith.constant 0 : index
    %c0_10 = arith.constant 0 : index
    %23 = vector.load %arg4[%c0_9, %c0_10] : memref<32x32xf32, #tpu.memory_space<vmem>>, vector<32x32xf32>
    %cst_11 = arith.constant dense<0.000000e+00> : vector<8x32xf32>
    %24 = tpu.matmul %22, %23, %cst_11 {dimension_numbers = #tpu.dot_dimension_numbers<[1], [0], [0], [1], [0, 0, 1, 1], [], []>} : vector<8x32xf32>, vector<32x32xf32>, vector<8x32xf32> -> vector<8x32xf32>
    %c0_12 = arith.constant 0 : index
    %c0_13 = arith.constant 0 : index
    %25 = vector.load %arg5[%c0_12, %c0_13] : memref<1x32xf32, #tpu.memory_space<vmem>>, vector<1x32xf32>
    %26 = vector.broadcast %25 : vector<1x32xf32> to vector<8x32xf32>
    %27 = arith.addf %24, %26 : vector<8x32xf32>
    %28 = arith.addf %27, %0 : vector<8x32xf32>
    %c0_14 = arith.constant 0 : index
    %c0_15 = arith.constant 0 : index
    %29 = vector.load %arg6[%c0_14, %c0_15] : memref<8x32xf32, #tpu.memory_space<vmem>>, vector<8x32xf32>
    tpu.vector_store %arg6[%c0_14, %c0_15], %28 {strides = array<i32>} : memref<8x32xf32, #tpu.memory_space<vmem>>, vector<8x32xf32>,
    return
  }
  func.func @transform_0(%arg0: i32) -> (i32, i32) {
    %c0_i32 = arith.constant 0 : i32
    %c0_i32_0 = arith.constant 0 : i32
    return %arg0, %c0_i32 : i32, i32
  }
  func.func @transform_1(%arg0: i32) -> (i32, i32) {
    %c0_i32 = arith.constant 0 : i32
    %c0_i32_0 = arith.constant 0 : i32
    %c0_i32_1 = arith.constant 0 : i32
    return %c0_i32, %c0_i32_0 : i32, i32
  }
  func.func @transform_2(%arg0: i32) -> (i32, i32) {
    %c0_i32 = arith.constant 0 : i32
    %c0_i32_0 = arith.constant 0 : i32
    %c0_i32_1 = arith.constant 0 : i32
    return %c0_i32, %c0_i32_0 : i32, i32
  }
  func.func @transform_3(%arg0: i32) -> (i32, i32) {
    %c0_i32 = arith.constant 0 : i32
    %c0_i32_0 = arith.constant 0 : i32
    %c0_i32_1 = arith.constant 0 : i32
    return %c0_i32, %c0_i32_0 : i32, i32
  }
  func.func @transform_4(%arg0: i32) -> (i32, i32) {
    %c0_i32 = arith.constant 0 : i32
    %c0_i32_0 = arith.constant 0 : i32
    %c0_i32_1 = arith.constant 0 : i32
    return %c0_i32, %c0_i32_0 : i32, i32
  }
  func.func @transform_5(%arg0: i32) -> (i32, i32) {
    %c0_i32 = arith.constant 0 : i32
    %c0_i32_0 = arith.constant 0 : i32
    return %arg0, %c0_i32 : i32, i32
  }
}

module attributes {stable_mosaic.version = 11 : i64} {
  func.func @_residual_resident_kernel(%arg0: i32, %arg1: memref<8x32xf32, #tpu.memory_space<vmem>>, %arg2: memref<1x32xf32, #tpu.memory_space<vmem>>, %arg3: memref<1x32xf32, #tpu.memory_space<vmem>>, %arg4: memref<32x32xf32, #tpu.memory_space<vmem>>, %arg5: memref<1x32xf32, #tpu.memory_space<vmem>>, %arg6: memref<8x32xf32, #tpu.memory_space<vmem>>) attributes {dimension_semantics = [#tpu.dimension_semantics<parallel>], iteration_bounds = array<i64: 2>, scalar_prefetch = 0 : i64, scratch_operands = 0 : i64, tpu.core_type = #tpu.core_type<tc>, window_params = [{transform_indices = @transform_0, window_bounds = array<i64: 8, 32>}, {pipeline_mode = #tpu.pipeline_mode<synchronous>, transform_indices = @transform_1, window_bounds = array<i64: 1, 32>}, {pipeline_mode = #tpu.pipeline_mode<synchronous>, transform_indices = @transform_2, window_bounds = array<i64: 1, 32>}, {pipeline_mode = #tpu.pipeline_mode<synchronous>, transform_indices = @transform_3, window_bounds = array<i64: 32, 32>}, {pipeline_mode = #tpu.pipeline_mode<synchronous>, transform_indices = @transform_4, window_bounds = array<i64: 1, 32>}, {transform_indices = @transform_5, window_bounds = array<i64: 8, 32>}]} {
    %c0 = arith.constant 0 : index
    %c0_0 = arith.constant 0 : index
    %0 = vector.load %arg1[%c0, %c0_0] : memref<8x32xf32, #tpu.memory_space<vmem>>, vector<8x32xf32>
    %c0_1 = arith.constant 0 : index
    %c0_2 = arith.constant 0 : index
    %1 = vector.load %arg2[%c0_1, %c0_2] : memref<1x32xf32, #tpu.memory_space<vmem>>, vector<1x32xf32>
    %c0_3 = arith.constant 0 : index
    %c0_4 = arith.constant 0 : index
    %2 = vector.load %arg3[%c0_3, %c0_4] : memref<1x32xf32, #tpu.memory_space<vmem>>, vector<1x32xf32>
    %cst = arith.constant dense<0.000000e+00> : vector<8xf32>
    %3 = vector.multi_reduction <add>, %0, %cst [1] : vector<8x32xf32> to vector<8xf32>
    %4 = vector.shape_cast %3 : vector<8xf32> to vector<8x1xf32>
    %cst_5 = arith.constant 3.200000e+01 : f32
    %5 = vector.broadcast %cst_5 : f32 to vector<8x1xf32>
    %6 = arith.divf %4, %5 : vector<8x1xf32>
    %7 = vector.broadcast %6 : vector<8x1xf32> to vector<8x32xf32>
    %8 = arith.subf %0, %7 : vector<8x32xf32>
    %9 = arith.mulf %8, %8 : vector<8x32xf32>
    %cst_6 = arith.constant dense<0.000000e+00> : vector<8xf32>
    %10 = vector.multi_reduction <add>, %9, %cst_6 [1] : vector<8x32xf32> to vector<8xf32>
    %11 = vector.shape_cast %10 : vector<8xf32> to vector<8x1xf32>
    %cst_7 = arith.constant 3.200000e+01 : f32
    %12 = vector.broadcast %cst_7 : f32 to vector<8x1xf32>
    %13 = arith.divf %11, %12 : vector<8x1xf32>
    %cst_8 = arith.constant 9.99999974E-6 : f32
    %14 = vector.broadcast %cst_8 : f32 to vector<8x1xf32>
    %15 = arith.addf %13, %14 : vector<8x1xf32>
    %16 = math.rsqrt %15 : vector<8x1xf32>
    %17 = vector.broadcast %16 : vector<8x1xf32> to vector<8x32xf32>
    %18 = arith.mulf %8, %17 : vector<8x32xf32>
    %19 = vector.broadcast %1 : vector<1x32xf32> to vector<8x32xf32>
    %20 = arith.mulf %18, %19 : vector<8x32xf32>
    %21 = vector.broadcast %2 : vector<1x32xf32> to vector<8x32xf32>
    %22 = arith.addf %20, %21 : vector<8x32xf32>
    %c0_9 = arith.constant 0 : index
    %c0_10 = arith.constant 0 : index
    %23 = vector.load %arg4[%c0_9, %c0_10] : memref<32x32xf32, #tpu.memory_space<vmem>>, vector<32x32xf32>
    %cst_11 = arith.constant dense<0.000000e+00> : vector<8x32xf32>
    %24 = tpu.matmul %22, %23, %cst_11 {dimension_numbers = #tpu.dot_dimension_numbers<[1], [0], [0], [1], [0, 0, 1, 1], [], []>} : vector<8x32xf32>, vector<32x32xf32>, vector<8x32xf32> -> vector<8x32xf32>
    %c0_12 = arith.constant 0 : index
    %c0_13 = arith.constant 0 : index
    %25 = vector.load %arg5[%c0_12, %c0_13] : memref<1x32xf32, #tpu.memory_space<vmem>>, vector<1x32xf32>
    %26 = vector.broadcast %25 : vector<1x32xf32> to vector<8x32xf32>
    %27 = arith.addf %24, %26 : vector<8x32xf32>
    %28 = arith.addf %27, %0 : vector<8x32xf32>
    %c0_14 = arith.constant 0 : index
    %c0_15 = arith.constant 0 : index
    %29 = vector.load %arg6[%c0_14, %c0_15] : memref<8x32xf32, #tpu.memory_space<vmem>>, vector<8x32xf32>
    tpu.vector_store %arg6[%c0_14, %c0_15], %28 {strides = array<i32>} : memref<8x32xf32, #tpu.memory_space<vmem>>, vector<8x32xf32>,
    return
  }
  func.func @transform_0(%arg0: i32) -> (i32, i32) {
    %c0_i32 = arith.constant 0 : i32
    %c0_i32_0 = arith.constant 0 : i32
    return %arg0, %c0_i32 : i32, i32
  }
  func.func @transform_1(%arg0: i32) -> (i32, i32) {
    %c0_i32 = arith.constant 0 : i32
    %c0_i32_0 = arith.constant 0 : i32
    %c0_i32_1 = arith.constant 0 : i32
    return %c0_i32, %c0_i32_0 : i32, i32
  }
  func.func @transform_2(%arg0: i32) -> (i32, i32) {
    %c0_i32 = arith.constant 0 : i32
    %c0_i32_0 = arith.constant 0 : i32
    %c0_i32_1 = arith.constant 0 : i32
    return %c0_i32, %c0_i32_0 : i32, i32
  }
  func.func @transform_3(%arg0: i32) -> (i32, i32) {
    %c0_i32 = arith.constant 0 : i32
    %c0_i32_0 = arith.constant 0 : i32
    %c0_i32_1 = arith.constant 0 : i32
    return %c0_i32, %c0_i32_0 : i32, i32
  }
  func.func @transform_4(%arg0: i32) -> (i32, i32) {
    %c0_i32 = arith.constant 0 : i32
    %c0_i32_0 = arith.constant 0 : i32
    %c0_i32_1 = arith.constant 0 : i32
    return %c0_i32, %c0_i32_0 : i32, i32
  }
  func.func @transform_5(%arg0: i32) -> (i32, i32) {
    %c0_i32 = arith.constant 0 : i32
    %c0_i32_0 = arith.constant 0 : i32
    return %arg0, %c0_i32 : i32, i32
  }
}

</mosaic_0001>

<bundles_post_ra>
// kernel: tpu_custom_call.1
= control target key start
LH: loop header
LB: loop body
LE: loop exit
PB: predicated region body
PF: predicated region fallthrough
CT: control target
= control target key end

     0   :  { %10 = vsyncpa [#allocation3], 0  ;;  %s952_s0 = inlined_call_operand.hbm [shape: f32[16,32], index: 0, kind: input, shape index: {}]   ;;  %s953_s1 = inlined_call_operand.vmem [shape: f32[1,32], index: 1, kind: input, shape index: {}]   ;;  %s954_s2 = inlined_call_operand.vmem [shape: f32[1,32], index: 2, kind: input, shape index: {}]   ;;  %s955_s3 = inlined_call_operand.hbm [shape: f32[32,32], index: 3, kind: input, shape index: {}]   ;;  %s956_s4 = inlined_call_operand.vmem [shape: f32[1,32], index: 4, kind: input, shape index: {}]   ;;  %s957_s5 = inlined_call_operand.hbm [shape: f32[16,32], index: 5, kind: output, shape index: {}]  }
   0x1   :  { %12 = vsyncpa [#allocation3 + $0x1], 0 }
   0x2   :  { %13 = vsyncpa [#allocation6], 0 }
   0x3   :  { %14 = vsyncpa [#allocation4], 0 }
   0x4   :  { %16 = vsyncpa [#allocation4 + $0x1], 0  ;;  %s739_s18 = smov 0   ;;  %s741_s19 = smov 0  }
   0x5   :  { %s743_s20 = smov 0   ;;  %s745_s21 = smov 0  }
   0x6 LB: > { %s760_s22 = sadd.s32 4294967295, %s699_s21   ;;  %s467_s23 = sadd.s32 4294967294, %s699_s21   ;;  %s699_s21 = sphi %s745_s21, %s977_s21   ;;  %s695_s20 = sphi %s743_s20, %s976_s20   ;;  %s691_s19 = sphi %s741_s19, %s975_s19   ;;  %s687_s18 = sphi %s739_s18, %s974_s18  }
   0x7   : > { %p42_p0 = scmp.ne.s32.totalorder %s691_s19, %s687_s18  ;;  %p958_p1 = scmp.eq.s32.totalorder %s760_s22, 0 }
   0x8   : > { %p156_p3 = scmp.eq.s32.totalorder %s467_s23, 1  ;;  %p468_p5 = scmp.ge.s32.totalorder %s699_s21, 1 }
   0x9   : > { %p769_p4 = por %p958_p1, %p42_p0  ;;  %p163_p7 = scmp.lt.s32.totalorder %s699_s21, 3 }
   0xa   : > { %p774_p6 = por %p156_p3, %p42_p0  ;;  %s701_s27 = smov [#allocation5]  }
   0xb   : > { %s961_s24 = scalar_select %p769_p4, 1, 0 }
   0xc   : > { %s962_s25 = scalar_select %p774_p6, 1, 0 }
   0xd   : > { %p779_p8 = pnand %p468_p5, %p163_p7  ;;  %s181_s28 = sshll.u32 %s701_s27, 4  ;;  %s783_s28 = int_to_ptr.vmem [resolvable:$true] %s181_s28 }
   0xe   : > { %s795_s30 = sadd.s32 1, %s699_s21   ;;  %s29_s6 = sadd.s32 1, %s695_s20 }
   0xf   : > { %s963_s26 = scalar_select %p779_p8, 1, 0 }
  0x10   : > { %p515_p9 = pneg %p779_p8  ;;  %s26_s7 = ssub.s32 %s699_s21, %s795_s30 }
  0x11   : > { %s571_s10 = scalar_lea.hbm %s955_s3, 512 }
  0x12   : > { %p790_p11 = pnand %p515_p9, %p958_p1  ;;  %p572_p12 = scmp.ne.s32.totalorder %s955_s3, %s571_s10 }
  0x13   : > { %p578_p5 = scmp.lt.u32.totalorder %s571_s10, %s955_s3 }
  0x14   : > { %p573_p13 = pneg %p790_p11 }
  0x16   : > { %p574_p0 = pnand %p573_p13, %p572_p12 }
  0x18   : > { %p575_p3 = pneg %p574_p0 }
  0x1a   : > { %p580_p7 = pnand %p578_p5, %p575_p3 }
  0x1c   : > { %583 = shalt.err (!%p580_p7)
}
  0x1d   : > { %s584_s15 = scalar_lea.vmem %s783_s28, 512  ;;  %p592_p2 = scmp.lt.s32.totalorder %s783_s28, %s783_s28 }
  0x1e   : > { %p585_p9 = scmp.ne.s32.totalorder %s783_s28, %s584_s15  ;;  %p593_p6 = scmp.lt.s32.totalorder %s584_s15, %s584_s15 }
  0x20   : > { %p587_p10 = pnand %p585_p9, %p573_p13  ;;  %p594_p4 = por %p593_p6, %p592_p2 }
  0x22   : > { %p588_p1 = pneg %p587_p10 }
  0x24   : > { %p595_p8 = pnand %p594_p4, %p588_p1 }
  0x26   : > { %598 = shalt.err (!%p595_p8)
}
  0x27   : > { %s702_s16 = smov 128   ;;  %s703_s17 = smov 8  }
  0x28   : > { %518 = dma.hbm_to_vmem [thread:$0]  (!%p790_p11), %s955_s3, 512, %s783_s28, [#allocation6], %s702_s16, %s702_s16, %s703_s17  }
  0x29   : > { %p27_p2 = scmp.eq.s32.totalorder %s26_s7, 0  ;;  %p36_p1 = scmp.ne.s32.totalorder %s695_s20, %s691_s19 }
  0x2a   : > { %p37_p4 = scmp.eq.s32.totalorder %s699_s21, 0  ;;  %p528_p6 = scmp.lt.s32.totalorder %s699_s21, 2 }
  0x2b   : > { %s826_s8 = scalar_select %p27_p2, %s695_s20, %s29_s6  }
  0x2c   : > { %p38_p8 = por %p37_p4, %p36_p1  ;;  %p965_p10 = scmp.eq.s32.totalorder %s760_s22, 1 }
  0x2d   : > { %s198_s10 = sand.u32 1, %s695_s20   ;;  %s472_s11 = sshll.u32 %s699_s21, 7 }
  0x2e   : > { %p830_p12 = por %p965_p10, %p36_p1  ;;  %s471_s12 = sshll.u32 %s198_s10, 3 }
  0x2f   : > { %s839_s14 = scalar_lea.hbm %s952_s0, %s472_s11  ;;  %s202_s28 = scalar_lea.vmem [#allocation2], %s471_s12 }
  0x30   : > { %s209_s6 = sshll.u32 %s202_s28, 4  ;;  %p841_p11 = pnand %p528_p6, %p38_p8  ;;  %s845_s6 = int_to_ptr.vmem [resolvable:$true] %s209_s6 }
  0x31   : > { %s199_s15 = scalar_lea.sflag [#allocation3], %s198_s10  ;;  %s599_s16 = scalar_lea.hbm %s839_s14, 128 }
  0x32   : > { %p600_p13 = scmp.ne.s32.totalorder %s839_s14, %s599_s16  ;;  %p601_p0 = pneg %p841_p11 }
  0x33   : > { %s604_s27 = scalar_lea.hbm %s952_s0, 256  ;;  %p605_p7 = scmp.lt.u32.totalorder %s839_s14, %s952_s0 }
  0x34   : > { %p602_p3 = pnand %p601_p0, %p600_p13  ;;  %p606_p9 = scmp.lt.u32.totalorder %s604_s27, %s599_s16 }
  0x35   : > { %p608_p1 = scmp.lt.u32.totalorder %s599_s16, %s839_s14 }
  0x36   : > { %p603_p5 = pneg %p602_p3  ;;  %p607_p2 = por %p606_p9, %p605_p7 }
  0x38   : > { %p609_p4 = por %p608_p1, %p607_p2 }
  0x3a   : > { %p610_p6 = pnand %p609_p4, %p603_p5 }
  0x3c   : > { %613 = shalt.err (!%p610_p6)
}
  0x3d   : > { %s614_s10 = scalar_lea.vmem %s845_s6, 128  ;;  %s704_s29 = smov [#allocation2]  }
  0x3e   : > { %p615_p8 = scmp.ne.s32.totalorder %s845_s6, %s614_s10  ;;  %s619_s13 = sshll.u32 %s704_s29, 4  ;;  %s620_s13 = int_to_ptr.vmem [resolvable:$false] %s619_s13 }
  0x3f   : > { %s621_s28 = scalar_lea.vmem %s620_s13, 256  ;;  %p622_p3 = scmp.lt.s32.totalorder %s845_s6, %s620_s13 }
  0x40   : > { %p617_p10 = pnand %p615_p8, %p601_p0  ;;  %p623_p7 = scmp.lt.s32.totalorder %s621_s28, %s614_s10 }
  0x42   : > { %p618_p13 = pneg %p617_p10  ;;  %p624_p9 = por %p623_p7, %p622_p3 }
  0x44   : > { %p625_p2 = pnand %p624_p9, %p618_p13 }
  0x46   : > { %628 = shalt.err (!%p625_p2)
}
  0x47   : > { %522 = dma.hbm_to_vmem [thread:$0]  (!%p841_p11), %s839_s14, 128, %s845_s6, %s199_s15  }
  0x48   : > { %p968_p5 = scmp.ne.s32.totalorder %s963_s26, 0 }
  0x49   : > { %s875_s16 = sand.u32 (!%p968_p5), 1, %s691_s19   ;;  %p969_p0 = scmp.ne.s32.totalorder (!%p968_p5), %s961_s24, 0 }
  0x4a   : > { %218 = sbr.rel (%p968_p5) target bundleno = 629 (0x275), region = 40  ;;  %s474_s17 = sshll.u32 (!%p968_p5), %s875_s16, 3 }
  0x4b   : > { %s221_s23 = scalar_lea.sflag (!%p968_p5), [#allocation3], %s875_s16  ;;  %s224_s27 = scalar_lea.vmem (!%p968_p5), [#allocation2], %s474_s17 }
  0x51   : > { %674 = dma.done.wait (%p969_p0), %s221_s23, 128  }
  0x52   : > { %676 = vsyncadd (%p969_p0), %s221_s23, 4294967168  ;;  %p970_p11 = scmp.eq.s32.totalorder %s760_s22, 0 }
  0x54   : > { %678 = dma.done.wait (%p970_p11), [#allocation6], 512   ;;  %p971_p1 = pmov %p970_p11 }
  0x55   : > { %vm258_vm0 = vcmask 261120   ;;  %v255_v0 = vld [vmem:[%s224_s27] sm:$0xff]  ;;  %v287_v7 = vld [vmem:[#allocation5] sm:$0xff]  ;;  %v288_v8 = vld [vmem:[#allocation5 + $0x8] sm:$0xff]  ;;  %v705_v10 = vmov 0.0|0.0   ;;  %vm706_vm1 = vmmov 0  }
  0x56   : > { %680 = vsyncadd (%p971_p1), [#allocation6], 4294966784  ;;  %v259_v1 = vsel %vm258_vm0, %v255_v0, 0.0  ;;  %v289_v9 = vld [vmem:[#allocation5 + $0x10] sm:$0xff]  ;;  %501 = vmatprep.subr.bf16.mxu0 %v705_v10  ;;  %v502_v11 = vpack.c.bf16 %v288_v8, %v287_v7  ;;  %v290_v12 = vld [vmem:[#allocation5 + $0x18] sm:$0xff]  ;;  %v707_v13 = vmov 0.0  }
  0x57   : > { %260 = vadd.xlane.f32.xlu0 %v259_v1  ;;  %498 = vmatprep.mubr.msk.f32.mxu0 %vm706_vm1, %v707_v13  ;;  %v505_v14 = vpack.c.bf16 %v290_v12, %v289_v9  ;;  %v477_v19 = vld [vmem:[%s953_s1] ss:$0 sm:$0xff]  ;;  %s482_s11 = sshll.u32 %s760_s22, 7  ;;  %s254_s12 = scalar_lea.vmem [#allocation7], %s474_s17 }
  0x58   : > { %503 = vmatpush3.bf16.msra.mxu0 %v502_v11  ;;  %v478_v21 = vld [vmem:[%s954_s2] ss:$0 sm:$0xff]  ;;  %s387_s10 = sshll.u32 %s254_s12, 4  ;;  %s907_s28 = scalar_lea.hbm %s957_s5, %s482_s11  ;;  %s909_s10 = int_to_ptr.vmem [resolvable:$true] %s387_s10 }
  0x59   : > { %504 = vmatprep.subr.bf16.mxu0 %v705_v10  ;;  %v479_v24 = vld [vmem:[%s956_s4] ss:$0 sm:$0xff]  ;;  %s374_s23 = scalar_lea.sflag [#allocation4], %s875_s16  ;;  %s629_s22 = scalar_lea.vmem %s909_s10, 128 }
  0x5a   : > { %p630_p4 = scmp.ne.s32.totalorder %s909_s10, %s629_s22  ;;  %s708_s17 = smov [#allocation7]  }
  0x5b   : > { %s633_s27 = sshll.u32 %s708_s17, 4  ;;  %s634_s27 = int_to_ptr.vmem [resolvable:$false] %s633_s27 }
  0x5c   : > { %506 = vmatpush3.bf16.msra.mxu0 %v505_v14  ;;  %p631_p6 = pnand %p630_p4, %p830_p12  ;;  %s635_s24 = scalar_lea.vmem %s634_s27, 256 }
  0x5d   : > { %p636_p10 = scmp.lt.s32.totalorder %s909_s10, %s634_s27  ;;  %p637_p13 = scmp.lt.s32.totalorder %s635_s24, %s629_s22 }
  0x5e   : > { %p632_p8 = pneg %p631_p6 }
  0x5f   : > { %p638_p3 = por %p637_p13, %p636_p10 }
  0x61   : > { %p639_p7 = pnand %p638_p3, %p632_p8 }
  0xe4   : > { %v261_v2 = vpop.xlane.xlu0 %260 }
  0xe5   : > { %v263_v3 = vmul.f32 0.03125, %v261_v2 }
  0xe7   : > { %v264_v4 = vsub.f32 %v255_v0, %v263_v3 }
  0xe9   : > { %v265_v5 = vmul.f32 %v264_v4, %v264_v4 }
  0xeb   : > { %v266_v6 = vsel %vm258_vm0, %v265_v5, 0.0 }
  0xec   : > { %267 = vadd.xlane.f32.xlu0 %v266_v6 }
 0x179   : > { %v268_v15 = vpop.xlane.xlu0 %267 }
 0x17a   : > { %v269_v16 = vmul.f32 0.03125, %v268_v15 }
 0x17c   : > { %v270_v17 = vadd.f32 1e-05, %v269_v16 }
 0x17e   : > { %569 = vrsqrt.f32 %v270_v17 }
 0x188   : > { %v570_v18 = vpop.eup %569 }
 0x189   : > { %v272_v20 = vmul.f32 %v570_v18, %v264_v4 }
 0x18b   : > { %v279_v22 = vmul.f32 %v477_v19, %v272_v20 }
 0x18d   : > { %v286_v23 = vadd.f32 %v478_v21, %v279_v22 }
 0x18f   : > { %499 = vmatmul.mubr.msk.f32.vlgmr.msra.gmra.mrb[0].mxu0 %vm258_vm0, %v286_v23 }
 0x262   : > { %v367_v25 = vpop.f32.mrb[0].mxu0 }
 0x263   : > { %v368_v26 = vadd.f32 %v479_v24, %v367_v25  ;;  %v500_v27 = vpop.f32.mrb[1].mxu0 }
 0x265   : > { %v371_v28 = vadd.f32 %v368_v26, %v255_v0 }
 0x267   : > { %372 = vst.msk [vmem:[%s254_s12] sm:$0xff] %vm258_vm0, %v371_v28 }
 0x268   : > { %642 = shalt.err (!%p639_p7)
}
 0x269   : > { %s643_s16 = scalar_lea.hbm %s907_s28, 128  ;;  %s647_s6 = scalar_lea.hbm %s957_s5, 256 }
 0x26a   : > { %p644_p9 = scmp.ne.s32.totalorder %s907_s28, %s643_s16  ;;  %p648_p0 = scmp.lt.u32.totalorder %s907_s28, %s957_s5 }
 0x26b   : > { %p649_p11 = scmp.lt.u32.totalorder %s647_s6, %s643_s16  ;;  %p651_p4 = scmp.lt.u32.totalorder %s643_s16, %s907_s28 }
 0x26c   : > { %p645_p2 = pnand %p644_p9, %p830_p12 }
 0x26d   : > { %p650_p1 = por %p649_p11, %p648_p0 }
 0x26e   : > { %p646_p5 = pneg %p645_p2 }
 0x26f   : > { %p652_p6 = por %p651_p4, %p650_p1 }
 0x271   : > { %p653_p8 = pnand %p652_p6, %p646_p5 }
 0x273   : > { %656 = shalt.err (!%p653_p8)
}
 0x274   : > { %513 = dma.vmem_to_hbm [thread:$0]  (%p830_p12), %s909_s10, 128, %s907_s28, %s374_s23  }
 0x275 PF: > { %s399_s11 = sand.u32 1, %s687_s18   ;;  %p972_p10 = scmp.ne.s32.totalorder %s962_s25, 0 }
 0x276   : > { %p973_p13 = scmp.ge.s32.totalorder %s699_s21, 2  ;;  %s400_s12 = scalar_lea.sflag [#allocation4], %s399_s11 }
 0x278   : > { %p524_p3 = pnand %p973_p13, %p972_p10 }
 0x27a   : > { %682 = dma.done.wait (!%p524_p3), %s400_s12, 128  }
 0x27b   : > { %684 = vsyncadd (!%p524_p3), %s400_s12, 4294967168  ;;  %p19_p7 = scmp.ge.s32.totalorder %s795_s30, 4   ;;  %s974_s18 = smov %s691_s19 }
 0x27c   : > { %s975_s19 = smov %s695_s20  ;;  %s976_s20 = smov %s826_s8 }
 0x27d   : > { %s977_s21 = smov %s795_s30  ;;  %21 = sbr.rel (!%p19_p7) target bundleno = 6 (0x6), region = 89 }
 0x284   :  { %405 = vsyncpa [#allocation3], 1 }
 0x285   :  { %407 = vsyncpa [#allocation3 + $0x1], 1 }
 0x286   :  { %408 = vsyncpa [#allocation6], 1 }
 0x287   :  { %409 = vsyncpa [#allocation4], 1 }
 0x288   :  { %411 = vsyncpa [#allocation4 + $0x1], 1 }

// kernel: tpu_custom_call.1
= control target key start
LH: loop header
LB: loop body
LE: loop exit
PB: predicated region body
PF: predicated region fallthrough
CT: control target
= control target key end

     0   :  { %10 = vsyncpa [#allocation3], 0  ;;  %s952_s0 = inlined_call_operand.hbm [shape: f32[16,32], index: 0, kind: input, shape index: {}]   ;;  %s953_s1 = inlined_call_operand.vmem [shape: f32[1,32], index: 1, kind: input, shape index: {}]   ;;  %s954_s2 = inlined_call_operand.vmem [shape: f32[1,32], index: 2, kind: input, shape index: {}]   ;;  %s955_s3 = inlined_call_operand.hbm [shape: f32[32,32], index: 3, kind: input, shape index: {}]   ;;  %s956_s4 = inlined_call_operand.vmem [shape: f32[1,32], index: 4, kind: input, shape index: {}]   ;;  %s957_s5 = inlined_call_operand.hbm [shape: f32[16,32], index: 5, kind: output, shape index: {}]  }
   0x1   :  { %12 = vsyncpa [#allocation3 + $0x1], 0 }
   0x2   :  { %13 = vsyncpa [#allocation6], 0 }
   0x3   :  { %14 = vsyncpa [#allocation4], 0 }
   0x4   :  { %16 = vsyncpa [#allocation4 + $0x1], 0  ;;  %s739_s18 = smov 0   ;;  %s741_s19 = smov 0  }
   0x5   :  { %s743_s20 = smov 0   ;;  %s745_s21 = smov 0  }
   0x6 LB: > { %s760_s22 = sadd.s32 4294967295, %s699_s21   ;;  %s467_s23 = sadd.s32 4294967294, %s699_s21   ;;  %s699_s21 = sphi %s745_s21, %s977_s21   ;;  %s695_s20 = sphi %s743_s20, %s976_s20   ;;  %s691_s19 = sphi %s741_s19, %s975_s19   ;;  %s687_s18 = sphi %s739_s18, %s974_s18  }
   0x7   : > { %p42_p0 = scmp.ne.s32.totalorder %s691_s19, %s687_s18  ;;  %p958_p1 = scmp.eq.s32.totalorder %s760_s22, 0 }
   0x8   : > { %p156_p3 = scmp.eq.s32.totalorder %s467_s23, 1  ;;  %p468_p5 = scmp.ge.s32.totalorder %s699_s21, 1 }
   0x9   : > { %p769_p4 = por %p958_p1, %p42_p0  ;;  %p163_p7 = scmp.lt.s32.totalorder %s699_s21, 3 }
   0xa   : > { %p774_p6 = por %p156_p3, %p42_p0  ;;  %s701_s27 = smov [#allocation5]  }
   0xb   : > { %s961_s24 = scalar_select %p769_p4, 1, 0 }
   0xc   : > { %s962_s25 = scalar_select %p774_p6, 1, 0 }
   0xd   : > { %p779_p8 = pnand %p468_p5, %p163_p7  ;;  %s181_s28 = sshll.u32 %s701_s27, 4  ;;  %s783_s28 = int_to_ptr.vmem [resolvable:$true] %s181_s28 }
   0xe   : > { %s795_s30 = sadd.s32 1, %s699_s21   ;;  %s29_s6 = sadd.s32 1, %s695_s20 }
   0xf   : > { %s963_s26 = scalar_select %p779_p8, 1, 0 }
  0x10   : > { %p515_p9 = pneg %p779_p8  ;;  %s26_s7 = ssub.s32 %s699_s21, %s795_s30 }
  0x11   : > { %s571_s10 = scalar_lea.hbm %s955_s3, 512 }
  0x12   : > { %p790_p11 = pnand %p515_p9, %p958_p1  ;;  %p572_p12 = scmp.ne.s32.totalorder %s955_s3, %s571_s10 }
  0x13   : > { %p578_p5 = scmp.lt.u32.totalorder %s571_s10, %s955_s3 }
  0x14   : > { %p573_p13 = pneg %p790_p11 }
  0x16   : > { %p574_p0 = pnand %p573_p13, %p572_p12 }
  0x18   : > { %p575_p3 = pneg %p574_p0 }
  0x1a   : > { %p580_p7 = pnand %p578_p5, %p575_p3 }
  0x1c   : > { %583 = shalt.err (!%p580_p7)
}
  0x1d   : > { %s584_s15 = scalar_lea.vmem %s783_s28, 512  ;;  %p592_p2 = scmp.lt.s32.totalorder %s783_s28, %s783_s28 }
  0x1e   : > { %p585_p9 = scmp.ne.s32.totalorder %s783_s28, %s584_s15  ;;  %p593_p6 = scmp.lt.s32.totalorder %s584_s15, %s584_s15 }
  0x20   : > { %p587_p10 = pnand %p585_p9, %p573_p13  ;;  %p594_p4 = por %p593_p6, %p592_p2 }
  0x22   : > { %p588_p1 = pneg %p587_p10 }
  0x24   : > { %p595_p8 = pnand %p594_p4, %p588_p1 }
  0x26   : > { %598 = shalt.err (!%p595_p8)
}
  0x27   : > { %s702_s16 = smov 128   ;;  %s703_s17 = smov 8  }
  0x28   : > { %518 = dma.hbm_to_vmem [thread:$0]  (!%p790_p11), %s955_s3, 512, %s783_s28, [#allocation6], %s702_s16, %s702_s16, %s703_s17  }
  0x29   : > { %p27_p2 = scmp.eq.s32.totalorder %s26_s7, 0  ;;  %p36_p1 = scmp.ne.s32.totalorder %s695_s20, %s691_s19 }
  0x2a   : > { %p37_p4 = scmp.eq.s32.totalorder %s699_s21, 0  ;;  %p528_p6 = scmp.lt.s32.totalorder %s699_s21, 2 }
  0x2b   : > { %s826_s8 = scalar_select %p27_p2, %s695_s20, %s29_s6  }
  0x2c   : > { %p38_p8 = por %p37_p4, %p36_p1  ;;  %p965_p10 = scmp.eq.s32.totalorder %s760_s22, 1 }
  0x2d   : > { %s198_s10 = sand.u32 1, %s695_s20   ;;  %s472_s11 = sshll.u32 %s699_s21, 7 }
  0x2e   : > { %p830_p12 = por %p965_p10, %p36_p1  ;;  %s471_s12 = sshll.u32 %s198_s10, 3 }
  0x2f   : > { %s839_s14 = scalar_lea.hbm %s952_s0, %s472_s11  ;;  %s202_s28 = scalar_lea.vmem [#allocation2], %s471_s12 }
  0x30   : > { %s209_s6 = sshll.u32 %s202_s28, 4  ;;  %p841_p11 = pnand %p528_p6, %p38_p8  ;;  %s845_s6 = int_to_ptr.vmem [resolvable:$true] %s209_s6 }
  0x31   : > { %s199_s15 = scalar_lea.sflag [#allocation3], %s198_s10  ;;  %s599_s16 = scalar_lea.hbm %s839_s14, 128 }
  0x32   : > { %p600_p13 = scmp.ne.s32.totalorder %s839_s14, %s599_s16  ;;  %p601_p0 = pneg %p841_p11 }
  0x33   : > { %s604_s27 = scalar_lea.hbm %s952_s0, 256  ;;  %p605_p7 = scmp.lt.u32.totalorder %s839_s14, %s952_s0 }
  0x34   : > { %p602_p3 = pnand %p601_p0, %p600_p13  ;;  %p606_p9 = scmp.lt.u32.totalorder %s604_s27, %s599_s16 }
  0x35   : > { %p608_p1 = scmp.lt.u32.totalorder %s599_s16, %s839_s14 }
  0x36   : > { %p603_p5 = pneg %p602_p3  ;;  %p607_p2 = por %p606_p9, %p605_p7 }
  0x38   : > { %p609_p4 = por %p608_p1, %p607_p2 }
  0x3a   : > { %p610_p6 = pnand %p609_p4, %p603_p5 }
  0x3c   : > { %613 = shalt.err (!%p610_p6)
}
  0x3d   : > { %s614_s10 = scalar_lea.vmem %s845_s6, 128  ;;  %s704_s29 = smov [#allocation2]  }
  0x3e   : > { %p615_p8 = scmp.ne.s32.totalorder %s845_s6, %s614_s10  ;;  %s619_s13 = sshll.u32 %s704_s29, 4  ;;  %s620_s13 = int_to_ptr.vmem [resolvable:$false] %s619_s13 }
  0x3f   : > { %s621_s28 = scalar_lea.vmem %s620_s13, 256  ;;  %p622_p3 = scmp.lt.s32.totalorder %s845_s6, %s620_s13 }
  0x40   : > { %p617_p10 = pnand %p615_p8, %p601_p0  ;;  %p623_p7 = scmp.lt.s32.totalorder %s621_s28, %s614_s10 }
  0x42   : > { %p618_p13 = pneg %p617_p10  ;;  %p624_p9 = por %p623_p7, %p622_p3 }
  0x44   : > { %p625_p2 = pnand %p624_p9, %p618_p13 }
  0x46   : > { %628 = shalt.err (!%p625_p2)
}
  0x47   : > { %522 = dma.hbm_to_vmem [thread:$0]  (!%p841_p11), %s839_s14, 128, %s845_s6, %s199_s15  }
  0x48   : > { %p968_p5 = scmp.ne.s32.totalorder %s963_s26, 0 }
  0x49   : > { %s875_s16 = sand.u32 (!%p968_p5), 1, %s691_s19   ;;  %p969_p0 = scmp.ne.s32.totalorder (!%p968_p5), %s961_s24, 0 }
  0x4a   : > { %218 = sbr.rel (%p968_p5) target bundleno = 629 (0x275), region = 40  ;;  %s474_s17 = sshll.u32 (!%p968_p5), %s875_s16, 3 }
  0x4b   : > { %s221_s23 = scalar_lea.sflag (!%p968_p5), [#allocation3], %s875_s16  ;;  %s224_s27 = scalar_lea.vmem (!%p968_p5), [#allocation2], %s474_s17 }
  0x51   : > { %674 = dma.done.wait (%p969_p0), %s221_s23, 128  }
  0x52   : > { %676 = vsyncadd (%p969_p0), %s221_s23, 4294967168  ;;  %p970_p11 = scmp.eq.s32.totalorder %s760_s22, 0 }
  0x54   : > { %678 = dma.done.wait (%p970_p11), [#allocation6], 512   ;;  %p971_p1 = pmov %p970_p11 }
  0x55   : > { %vm258_vm0 = vcmask 261120   ;;  %v255_v0 = vld [vmem:[%s224_s27] sm:$0xff]  ;;  %v287_v7 = vld [vmem:[#allocation5] sm:$0xff]  ;;  %v288_v8 = vld [vmem:[#allocation5 + $0x8] sm:$0xff]  ;;  %v705_v10 = vmov 0.0|0.0   ;;  %vm706_vm1 = vmmov 0  }
  0x56   : > { %680 = vsyncadd (%p971_p1), [#allocation6], 4294966784  ;;  %v259_v1 = vsel %vm258_vm0, %v255_v0, 0.0  ;;  %v289_v9 = vld [vmem:[#allocation5 + $0x10] sm:$0xff]  ;;  %501 = vmatprep.subr.bf16.mxu0 %v705_v10  ;;  %v502_v11 = vpack.c.bf16 %v288_v8, %v287_v7  ;;  %v290_v12 = vld [vmem:[#allocation5 + $0x18] sm:$0xff]  ;;  %v707_v13 = vmov 0.0  }
  0x57   : > { %260 = vadd.xlane.f32.xlu0 %v259_v1  ;;  %498 = vmatprep.mubr.msk.f32.mxu0 %vm706_vm1, %v707_v13  ;;  %v505_v14 = vpack.c.bf16 %v290_v12, %v289_v9  ;;  %v477_v19 = vld [vmem:[%s953_s1] ss:$0 sm:$0xff]  ;;  %s482_s11 = sshll.u32 %s760_s22, 7  ;;  %s254_s12 = scalar_lea.vmem [#allocation7], %s474_s17 }
  0x58   : > { %503 = vmatpush3.bf16.msra.mxu0 %v502_v11  ;;  %v478_v21 = vld [vmem:[%s954_s2] ss:$0 sm:$0xff]  ;;  %s387_s10 = sshll.u32 %s254_s12, 4  ;;  %s907_s28 = scalar_lea.hbm %s957_s5, %s482_s11  ;;  %s909_s10 = int_to_ptr.vmem [resolvable:$true] %s387_s10 }
  0x59   : > { %504 = vmatprep.subr.bf16.mxu0 %v705_v10  ;;  %v479_v24 = vld [vmem:[%s956_s4] ss:$0 sm:$0xff]  ;;  %s374_s23 = scalar_lea.sflag [#allocation4], %s875_s16  ;;  %s629_s22 = scalar_lea.vmem %s909_s10, 128 }
  0x5a   : > { %p630_p4 = scmp.ne.s32.totalorder %s909_s10, %s629_s22  ;;  %s708_s17 = smov [#allocation7]  }
  0x5b   : > { %s633_s27 = sshll.u32 %s708_s17, 4  ;;  %s634_s27 = int_to_ptr.vmem [resolvable:$false] %s633_s27 }
  0x5c   : > { %506 = vmatpush3.bf16.msra.mxu0 %v505_v14  ;;  %p631_p6 = pnand %p630_p4, %p830_p12  ;;  %s635_s24 = scalar_lea.vmem %s634_s27, 256 }
  0x5d   : > { %p636_p10 = scmp.lt.s32.totalorder %s909_s10, %s634_s27  ;;  %p637_p13 = scmp.lt.s32.totalorder %s635_s24, %s629_s22 }
  0x5e   : > { %p632_p8 = pneg %p631_p6 }
  0x5f   : > { %p638_p3 = por %p637_p13, %p636_p10 }
  0x61   : > { %p639_p7 = pnand %p638_p3, %p632_p8 }
  0xe4   : > { %v261_v2 = vpop.xlane.xlu0 %260 }
  0xe5   : > { %v263_v3 = vmul.f32 0.03125, %v261_v2 }
  0xe7   : > { %v264_v4 = vsub.f32 %v255_v0, %v263_v3 }
  0xe9   : > { %v265_v5 = vmul.f32 %v264_v4, %v264_v4 }
  0xeb   : > { %v266_v6 = vsel %vm258_vm0, %v265_v5, 0.0 }
  0xec   : > { %267 = vadd.xlane.f32.xlu0 %v266_v6 }
 0x179   : > { %v268_v15 = vpop.xlane.xlu0 %267 }
 0x17a   : > { %v269_v16 = vmul.f32 0.03125, %v268_v15 }
 0x17c   : > { %v270_v17 = vadd.f32 1e-05, %v269_v16 }
 0x17e   : > { %569 = vrsqrt.f32 %v270_v17 }
 0x188   : > { %v570_v18 = vpop.eup %569 }
 0x189   : > { %v272_v20 = vmul.f32 %v570_v18, %v264_v4 }
 0x18b   : > { %v279_v22 = vmul.f32 %v477_v19, %v272_v20 }
 0x18d   : > { %v286_v23 = vadd.f32 %v478_v21, %v279_v22 }
 0x18f   : > { %499 = vmatmul.mubr.msk.f32.vlgmr.msra.gmra.mrb[0].mxu0 %vm258_vm0, %v286_v23 }
 0x262   : > { %v367_v25 = vpop.f32.mrb[0].mxu0 }
 0x263   : > { %v368_v26 = vadd.f32 %v479_v24, %v367_v25  ;;  %v500_v27 = vpop.f32.mrb[1].mxu0 }
 0x265   : > { %v371_v28 = vadd.f32 %v368_v26, %v255_v0 }
 0x267   : > { %372 = vst.msk [vmem:[%s254_s12] sm:$0xff] %vm258_vm0, %v371_v28 }
 0x268   : > { %642 = shalt.err (!%p639_p7)
}
 0x269   : > { %s643_s16 = scalar_lea.hbm %s907_s28, 128  ;;  %s647_s6 = scalar_lea.hbm %s957_s5, 256 }
 0x26a   : > { %p644_p9 = scmp.ne.s32.totalorder %s907_s28, %s643_s16  ;;  %p648_p0 = scmp.lt.u32.totalorder %s907_s28, %s957_s5 }
 0x26b   : > { %p649_p11 = scmp.lt.u32.totalorder %s647_s6, %s643_s16  ;;  %p651_p4 = scmp.lt.u32.totalorder %s643_s16, %s907_s28 }
 0x26c   : > { %p645_p2 = pnand %p644_p9, %p830_p12 }
 0x26d   : > { %p650_p1 = por %p649_p11, %p648_p0 }
 0x26e   : > { %p646_p5 = pneg %p645_p2 }
 0x26f   : > { %p652_p6 = por %p651_p4, %p650_p1 }
 0x271   : > { %p653_p8 = pnand %p652_p6, %p646_p5 }
 0x273   : > { %656 = shalt.err (!%p653_p8)
}
 0x274   : > { %513 = dma.vmem_to_hbm [thread:$0]  (%p830_p12), %s909_s10, 128, %s907_s28, %s374_s23  }
 0x275 PF: > { %s399_s11 = sand.u32 1, %s687_s18   ;;  %p972_p10 = scmp.ne.s32.totalorder %s962_s25, 0 }
 0x276   : > { %p973_p13 = scmp.ge.s32.totalorder %s699_s21, 2  ;;  %s400_s12 = scalar_lea.sflag [#allocation4], %s399_s11 }
 0x278   : > { %p524_p3 = pnand %p973_p13, %p972_p10 }
 0x27a   : > { %682 = dma.done.wait (!%p524_p3), %s400_s12, 128  }
 0x27b   : > { %684 = vsyncadd (!%p524_p3), %s400_s12, 4294967168  ;;  %p19_p7 = scmp.ge.s32.totalorder %s795_s30, 4   ;;  %s974_s18 = smov %s691_s19 }
 0x27c   : > { %s975_s19 = smov %s695_s20  ;;  %s976_s20 = smov %s826_s8 }
 0x27d   : > { %s977_s21 = smov %s795_s30  ;;  %21 = sbr.rel (!%p19_p7) target bundleno = 6 (0x6), region = 89 }
 0x284   :  { %405 = vsyncpa [#allocation3], 1 }
 0x285   :  { %407 = vsyncpa [#allocation3 + $0x1], 1 }
 0x286   :  { %408 = vsyncpa [#allocation6], 1 }
 0x287   :  { %409 = vsyncpa [#allocation4], 1 }
 0x288   :  { %411 = vsyncpa [#allocation4 + $0x1], 1 }

</bundles_post_ra>
